<compile_context>
chip_gen: v7x
topology: tpu7x:2x2x1
jax: 0.10.0
libtpu: 0.0.40
codegen_flags: <defaults>
</compile_context>

<pallas_src>
import functools

import jax
import jax.numpy as jnp
from jax.experimental import pallas as pl
from jax.experimental.pallas import tpu as pltpu


def _ce_label_smooth_kernel(x_ref, t_ref, o_ref, acc_ref, *,
                            epsilon, num_classes, n_total, tile_n,
                            tiles_per_outer, ragged):
    i = pl.program_id(0)          # batch super-block ("parallel")
    j = pl.program_id(1)          # reduction tile    ("arbitrary")

    @pl.when(j == 0)
    def _init():
        acc_ref[...] = jnp.zeros_like(acc_ref)

    x = x_ref[...].astype(jnp.float32)            # (TILE_N, C)
    tgt = t_ref[...]                              # (TILE_N, 1) int32

    # Row-wise log-sum-exp over the class (lane) axis.
    m = jnp.max(x, axis=1, keepdims=True)                           # XLU
    lse = jnp.log(jnp.sum(jnp.exp(x - m), axis=1, keepdims=True))   # EUP + XLU

    # Fused smoothed-target weighted reduction: one reduce instead of two.
    class_ids = jax.lax.broadcasted_iota(jnp.int32, x.shape, 1)
    hi = jnp.float32(1.0 - epsilon + epsilon / num_classes)
    lo = jnp.float32(epsilon / num_classes)
    w = jnp.where(class_ids == tgt, hi, lo)
    wsum = jnp.sum(w * x, axis=1, keepdims=True)                    # XLU

    loss_row = (m + lse) - wsum                                     # (TILE_N, 1)

    if ragged:
        # Static: only emitted when the grid over-covers N.  At runtime only
        # tiles overlapping the ragged tail pay for iota + compare + select;
        # garbage (even NaN/Inf) in padded rows stays in those rows and is
        # discarded by the select.
        tile_start = (i * tiles_per_outer + j) * tile_n

        @pl.when(tile_start + tile_n > n_total)
        def _tail():
            row_ids = tile_start + jax.lax.broadcasted_iota(
                jnp.int32, (tile_n, 1), 0)
            acc_ref[...] += jnp.where(row_ids < n_total, loss_row, 0.0)

        @pl.when(tile_start + tile_n <= n_total)
        def _full():
            acc_ref[...] += loss_row
    else:
        acc_ref[...] += loss_row

    @pl.when(j == pl.num_programs(1) - 1)
    def _finalize():
        # One cross-sublane collapse per super-block; lane-dense store.
        o_ref[...] = jnp.broadcast_to(jnp.sum(acc_ref[...]), (1, 8, 128))


def cross_entropy_label_smooth(inputs, targets, *, num_classes, epsilon,
                               tile_n=None, tile_bytes_target=None):
    """inputs: (N, C) float logits (f32/bf16); targets: (N,) or (N,1) int labels."""
    n, c = inputs.shape
    assert c == num_classes
    t = targets.reshape(n, 1).astype(jnp.int32)

    itemsize = jnp.dtype(inputs.dtype).itemsize

    # --- generation-aware sizing ------------------------------------------
    try:
        vmem_cap = int(pltpu.get_tpu_info().vmem_capacity_bytes)
    except Exception:
        vmem_cap = 128 << 20                      # v5e/v6e; v7x reports 64 MiB
    if tile_bytes_target is None:
        # ~2 MiB logits tile on v7x (64 MiB VMEM/TC), ~4 MiB on v5e/v6e.
        tile_bytes_target = (2 << 20) if vmem_cap <= (64 << 20) else (4 << 20)

    # Sublane-packing multiple for the logits dtype (f32:8, bf16:16, int8:32).
    row_mult = {4: 8, 2: 16, 1: 32}.get(itemsize, 8)
    n_pad = ((n + row_mult - 1) // row_mult) * row_mult

    # Bytes-based tile sizing: grow the batch tile until the logits tile hits
    # the byte target (or covers the padded batch), regardless of row count.
    if tile_n is None:
        tile_n = tile_bytes_target // (c * itemsize)
    tile_n = int(max(row_mult, min((int(tile_n) // row_mult) * row_mult, n_pad)))

    # VMEM footprint including the 128-lane padding of the (tile_n, 1) int32
    # targets blocks (x2 buffers) and the (tile_n, 1) f32 accumulator scratch.
    def _footprint(tn):
        lane_pad = tn * 128 * 4
        return 3 * tn * c * itemsize + 2 * lane_pad + lane_pad

    while tile_n > row_mult and _footprint(tile_n) > vmem_cap // 2:
        tile_n = max(row_mult, ((tile_n // 2) // row_mult) * row_mult)

    num_tiles = int(pl.cdiv(n, tile_n))

    # Outer "parallel" super-blocks -> both TensorCores on v7x.
    n_outer = int(min(num_tiles, 2))
    tiles_per_outer = int(pl.cdiv(num_tiles, n_outer))
    n_outer = int(pl.cdiv(num_tiles, tiles_per_outer))
    ragged = bool((n_outer * tiles_per_outer * tile_n) != n)

    # Clamp the DMA tile index so padded grid steps re-read the last valid
    # tile (rows masked out in-kernel) instead of issuing an OOB DMA.
    last_tile = num_tiles - 1

    def tile_index(i, j):
        return (jnp.minimum(i * tiles_per_outer + j, last_tile), 0)

    logits_spec = pl.BlockSpec((tile_n, c), tile_index)
    if num_tiles >= 4:
        # Compute per tile is tiny; a 3rd buffer hides DMA issue latency.
        try:
            logits_spec = pl.BlockSpec((tile_n, c), tile_index,
                                       pipeline_mode=pl.Buffered(3))
        except TypeError:
            pass  # older jax without pipeline_mode: keep default double-buffer

    vmem_limit = int(min(max(16 << 20, _footprint(tile_n) + (8 << 20)),
                         max(32 << 20, vmem_cap - (16 << 20))))

    kernel = functools.partial(
        _ce_label_smooth_kernel,
        epsilon=float(epsilon),
        num_classes=int(num_classes),
        # Static n: grid extents / tile shapes / ragged flag already depend on
        # n, so an SMEM-scalar n would not avoid recompiles per batch size.
        n_total=int(n),
        tile_n=int(tile_n),
        tiles_per_outer=int(tiles_per_outer),
        ragged=ragged,
    )

    out = pl.pallas_call(
        kernel,
        out_shape=jax.ShapeDtypeStruct((n_outer, 8, 128), jnp.float32),
        grid_spec=pltpu.PrefetchScalarGridSpec(
            num_scalar_prefetch=0,
            grid=(n_outer, tiles_per_outer),
            in_specs=[
                logits_spec,
                pl.BlockSpec((tile_n, 1), tile_index),
            ],
            out_specs=pl.BlockSpec((1, 8, 128), lambda i, j: (i, 0, 0)),
            scratch_shapes=[pltpu.VMEM((tile_n, 1), jnp.float32)],
        ),
        compiler_params=pltpu.CompilerParams(
            dimension_semantics=("parallel", "arbitrary"),
            vmem_limit_bytes=vmem_limit,
        ),
    )(inputs, t)

    # Sum per-super-block partial losses and apply the batch mean.
    return jnp.sum(out[:, 0, 0]) / jnp.float32(n)


def _reference(logits, labels, num_classes, epsilon):
    lp = jax.nn.log_softmax(logits.astype(jnp.float32), axis=1)
    onehot = jax.nn.one_hot(labels, num_classes, dtype=jnp.float32)
    tgt = (1.0 - epsilon) * onehot + epsilon / num_classes
    return jnp.sum(jnp.mean(-tgt * lp, axis=0))


if __name__ == "__main__":
    num_classes = 32
    epsilon = 0.1

    key = jax.random.PRNGKey(0)
    k1, k2, k3, k4, k5, k6 = jax.random.split(key, 6)

    # Case 1: batch not a multiple of the tile -> multi-tile, two parallel
    # super-blocks, ragged-tail masking (batch=10, tile_n=8 -> 2 tiles).
    logits1 = jax.random.normal(k1, (10, num_classes), dtype=jnp.float32)
    labels1 = jax.random.randint(k2, (10,), 0, num_classes, dtype=jnp.int32)
    loss1 = cross_entropy_label_smooth(
        logits1, labels1, num_classes=num_classes, epsilon=epsilon, tile_n=8
    )
    jax.block_until_ready(loss1)
    ref1 = _reference(logits1, labels1, num_classes, epsilon)
    assert jnp.allclose(loss1, ref1, rtol=1e-5, atol=1e-5), (loss1, ref1)

    # Case 2: auto tile sizing path (batch=16, single tile, no masking).
    logits2 = jax.random.normal(k3, (16, num_classes), dtype=jnp.float32)
    labels2 = jax.random.randint(k4, (16,), 0, num_classes, dtype=jnp.int32)
    loss2 = cross_entropy_label_smooth(
        logits2, labels2, num_classes=num_classes, epsilon=epsilon
    )
    jax.block_until_ready(loss2)
    ref2 = _reference(logits2, labels2, num_classes, epsilon)
    assert jnp.allclose(loss2, ref2, rtol=1e-5, atol=1e-5), (loss2, ref2)

    # Case 3: bf16 logits (in-kernel f32 cast, 16-row sublane packing).
    logits3 = jax.random.normal(k5, (32, num_classes), dtype=jnp.bfloat16)
    labels3 = jax.random.randint(k6, (32,), 0, num_classes, dtype=jnp.int32)
    loss3 = cross_entropy_label_smooth(
        logits3, labels3, num_classes=num_classes, epsilon=epsilon, tile_n=16
    )
    jax.block_until_ready(loss3)
    ref3 = _reference(logits3, labels3, num_classes, epsilon)
    assert jnp.allclose(loss3, ref3, rtol=1e-4, atol=1e-4), (loss3, ref3)

    print("KERNEL_OK")
</pallas_src>

<mosaic_0001>
module attributes {stable_mosaic.version = 11 : i64} {
  func.func @_ce_label_smooth_kernel(%arg0: i32, %arg1: i32, %arg2: memref<8x32xf32, #tpu.memory_space<vmem>>, %arg3: memref<8x1xi32, #tpu.memory_space<vmem>>, %arg4: memref<1x8x128xf32, #tpu.memory_space<vmem>>, %arg5: memref<8x1xf32, #tpu.memory_space<vmem>>) attributes {dimension_semantics = [#tpu.dimension_semantics<parallel>, #tpu.dimension_semantics<arbitrary>], iteration_bounds = array<i64: 2, 1>, scalar_prefetch = 0 : i64, scratch_operands = 1 : i64, tpu.core_type = #tpu.core_type<tc>, window_params = [{transform_indices = @transform_0, window_bounds = array<i64: 8, 32>}, {transform_indices = @transform_1, window_bounds = array<i64: 8, 1>}, {transform_indices = @transform_2, window_bounds = array<i64: 1, 8, 128>}]} {
    %c0_i32 = arith.constant 0 : i32
    %0 = arith.cmpi eq, %arg1, %c0_i32 : i32
    %1 = arith.extui %0 : i1 to i32
    %c0_i32_0 = arith.constant 0 : i32
    %2 = arith.cmpi ne, %1, %c0_i32_0 : i32
    scf.if %2 {
      %cst_15 = arith.constant 0.000000e+00 : f32
      %38 = vector.broadcast %cst_15 : f32 to vector<8x1xf32>
      %c0_16 = arith.constant 0 : index
      %c0_17 = arith.constant 0 : index
      %39 = vector.load %arg5[%c0_16, %c0_17] : memref<8x1xf32, #tpu.memory_space<vmem>>, vector<8x1xf32>
      tpu.vector_store %arg5[%c0_16, %c0_17], %38 {strides = array<i32>} : memref<8x1xf32, #tpu.memory_space<vmem>>, vector<8x1xf32>,
    } else {
    }
    %c0 = arith.constant 0 : index
    %c0_1 = arith.constant 0 : index
    %3 = vector.load %arg2[%c0, %c0_1] : memref<8x32xf32, #tpu.memory_space<vmem>>, vector<8x32xf32>
    %c0_2 = arith.constant 0 : index
    %c0_3 = arith.constant 0 : index
    %4 = vector.load %arg3[%c0_2, %c0_3] : memref<8x1xi32, #tpu.memory_space<vmem>>, vector<8x1xi32>
    %cst = arith.constant dense<0xFF800000> : vector<8xf32>
    %5 = vector.multi_reduction <maximumf>, %3, %cst [1] : vector<8x32xf32> to vector<8xf32>
    %6 = vector.shape_cast %5 : vector<8xf32> to vector<8x1xf32>
    %7 = vector.broadcast %6 : vector<8x1xf32> to vector<8x32xf32>
    %8 = arith.subf %3, %7 : vector<8x32xf32>
    %9 = math.exp %8 : vector<8x32xf32>
    %cst_4 = arith.constant dense<0.000000e+00> : vector<8xf32>
    %10 = vector.multi_reduction <add>, %9, %cst_4 [1] : vector<8x32xf32> to vector<8xf32>
    %11 = vector.shape_cast %10 : vector<8xf32> to vector<8x1xf32>
    %12 = math.log %11 : vector<8x1xf32>
    %13 = tpu.iota {dimensions = array<i32: 1>} : vector<8x32xi32>
    %14 = vector.broadcast %4 : vector<8x1xi32> to vector<8x32xi32>
    %15 = arith.cmpi eq, %13, %14 : vector<8x32xi32>
    %cst_5 = arith.constant 0.903124988 : f32
    %cst_6 = arith.constant 3.125000e-03 : f32
    %16 = vector.broadcast %cst_5 : f32 to vector<8x32xf32>
    %17 = vector.broadcast %cst_6 : f32 to vector<8x32xf32>
    %18 = arith.select %15, %16, %17 : vector<8x32xi1>, vector<8x32xf32>
    %19 = arith.mulf %18, %3 : vector<8x32xf32>
    %cst_7 = arith.constant dense<0.000000e+00> : vector<8xf32>
    %20 = vector.multi_reduction <add>, %19, %cst_7 [1] : vector<8x32xf32> to vector<8xf32>
    %21 = vector.shape_cast %20 : vector<8xf32> to vector<8x1xf32>
    %22 = arith.addf %6, %12 : vector<8x1xf32>
    %23 = arith.subf %22, %21 : vector<8x1xf32>
    %c1_i32 = arith.constant 1 : i32
    %24 = arith.muli %arg0, %c1_i32 : i32
    %25 = arith.addi %24, %arg1 : i32
    %c8_i32 = arith.constant 8 : i32
    %26 = arith.muli %25, %c8_i32 : i32
    %c8_i32_8 = arith.constant 8 : i32
    %27 = arith.addi %26, %c8_i32_8 : i32
    %c10_i32 = arith.constant 10 : i32
    %28 = arith.cmpi sgt, %27, %c10_i32 : i32
    %29 = arith.extui %28 : i1 to i32
    %c0_i32_9 = arith.constant 0 : i32
    %30 = arith.cmpi ne, %29, %c0_i32_9 : i32
    scf.if %30 {
      %38 = tpu.iota {dimensions = array<i32: 0>} : vector<8x1xi32>
      %39 = vector.broadcast %26 : i32 to vector<8x1xi32>
      %40 = arith.addi %39, %38 : vector<8x1xi32>
      %c0_15 = arith.constant 0 : index
      %c0_16 = arith.constant 0 : index
      %41 = vector.load %arg5[%c0_15, %c0_16] : memref<8x1xf32, #tpu.memory_space<vmem>>, vector<8x1xf32>
      %c10_i32_17 = arith.constant 10 : i32
      %42 = vector.broadcast %c10_i32_17 : i32 to vector<8x1xi32>
      %43 = arith.cmpi slt, %40, %42 : vector<8x1xi32>
      %cst_18 = arith.constant 0.000000e+00 : f32
      %44 = vector.broadcast %cst_18 : f32 to vector<8x1xf32>
      %45 = arith.select %43, %23, %44 : vector<8x1xi1>, vector<8x1xf32>
      %46 = arith.addf %41, %45 : vector<8x1xf32>
      %c0_19 = arith.constant 0 : index
      %c0_20 = arith.constant 0 : index
      %47 = vector.load %arg5[%c0_19, %c0_20] : memref<8x1xf32, #tpu.memory_space<vmem>>, vector<8x1xf32>
      tpu.vector_store %arg5[%c0_19, %c0_20], %46 {strides = array<i32>} : memref<8x1xf32, #tpu.memory_space<vmem>>, vector<8x1xf32>,
    } else {
    }
    %c8_i32_10 = arith.constant 8 : i32
    %31 = arith.addi %26, %c8_i32_10 : i32
    %c10_i32_11 = arith.constant 10 : i32
    %32 = arith.cmpi sle, %31, %c10_i32_11 : i32
    %33 = arith.extui %32 : i1 to i32
    %c0_i32_12 = arith.constant 0 : i32
    %34 = arith.cmpi ne, %33, %c0_i32_12 : i32
    scf.if %34 {
      %c0_15 = arith.constant 0 : index
      %c0_16 = arith.constant 0 : index
      %38 = vector.load %arg5[%c0_15, %c0_16] : memref<8x1xf32, #tpu.memory_space<vmem>>, vector<8x1xf32>
      %39 = arith.addf %38, %23 : vector<8x1xf32>
      %c0_17 = arith.constant 0 : index
      %c0_18 = arith.constant 0 : index
      %40 = vector.load %arg5[%c0_17, %c0_18] : memref<8x1xf32, #tpu.memory_space<vmem>>, vector<8x1xf32>
      tpu.vector_store %arg5[%c0_17, %c0_18], %39 {strides = array<i32>} : memref<8x1xf32, #tpu.memory_space<vmem>>, vector<8x1xf32>,
    } else {
    }
    %c0_i32_13 = arith.constant 0 : i32
    %35 = arith.cmpi eq, %arg1, %c0_i32_13 : i32
    %36 = arith.extui %35 : i1 to i32
    %c0_i32_14 = arith.constant 0 : i32
    %37 = arith.cmpi ne, %36, %c0_i32_14 : i32
    scf.if %37 {
      %c0_15 = arith.constant 0 : index
      %c0_16 = arith.constant 0 : index
      %38 = vector.load %arg5[%c0_15, %c0_16] : memref<8x1xf32, #tpu.memory_space<vmem>>, vector<8x1xf32>
      %39 = vector.shape_cast %38 : vector<8x1xf32> to vector<1x8x1xf32>
      %cst_17 = arith.constant dense<0.000000e+00> : vector<1xf32>
      %40 = vector.multi_reduction <add>, %39, %cst_17 [1, 2] : vector<1x8x1xf32> to vector<1xf32>
      %41 = vector.shape_cast %40 : vector<1xf32> to vector<1x1x1xf32>
      %42 = vector.extract %41[0, 0, 0] : f32 from vector<1x1x1xf32>
      %43 = vector.broadcast %42 : f32 to vector<1x8x128xf32>
      %c0_18 = arith.constant 0 : index
      %c0_19 = arith.constant 0 : index
      %c0_20 = arith.constant 0 : index
      %44 = vector.load %arg4[%c0_18, %c0_19, %c0_20] : memref<1x8x128xf32, #tpu.memory_space<vmem>>, vector<1x8x128xf32>
      tpu.vector_store %arg4[%c0_18, %c0_19, %c0_20], %43 {strides = array<i32>} : memref<1x8x128xf32, #tpu.memory_space<vmem>>, vector<1x8x128xf32>,
    } else {
    }
    return
  }
  func.func @transform_0(%arg0: i32, %arg1: i32) -> (i32, i32) {
    %c1_i32 = arith.constant 1 : i32
    %0 = arith.muli %arg0, %c1_i32 : i32
    %1 = arith.addi %0, %arg1 : i32
    %c1_i32_0 = arith.constant 1 : i32
    %2 = arith.minsi %1, %c1_i32_0 : i32
    %c0_i32 = arith.constant 0 : i32
    %c0_i32_1 = arith.constant 0 : i32
    return %2, %c0_i32 : i32, i32
  }
  func.func @transform_1(%arg0: i32, %arg1: i32) -> (i32, i32) {
    %c1_i32 = arith.constant 1 : i32
    %0 = arith.muli %arg0, %c1_i32 : i32
    %1 = arith.addi %0, %arg1 : i32
    %c1_i32_0 = arith.constant 1 : i32
    %2 = arith.minsi %1, %c1_i32_0 : i32
    %c0_i32 = arith.constant 0 : i32
    %c0_i32_1 = arith.constant 0 : i32
    return %2, %c0_i32 : i32, i32
  }
  func.func @transform_2(%arg0: i32, %arg1: i32) -> (i32, i32, i32) {
    %c0_i32 = arith.constant 0 : i32
    %c0_i32_0 = arith.constant 0 : i32
    %c0_i32_1 = arith.constant 0 : i32
    return %arg0, %c0_i32, %c0_i32_0 : i32, i32, i32
  }
}

</mosaic_0001>

<bundles_post_ra>
// kernel: tpu_custom_call.1
= control target key start
LH: loop header
LB: loop body
LE: loop exit
PB: predicated region body
PF: predicated region fallthrough
CT: control target
= control target key end

     0   :  { %7 = vsyncpa [#allocation4], 0  ;;  %s697_s0 = inlined_call_operand.vmem [shape: f32[10,32], index: 0, kind: input, shape index: {}]   ;;  %s698_s1 = inlined_call_operand.vmem [shape: s32[10,1], index: 1, kind: input, shape index: {}]   ;;  %s699_s2 = inlined_call_operand.hbm [shape: f32[2,8,128], index: 2, kind: output, shape index: {}]  }
   0x1   :  { %9 = vsyncpa [#allocation4 + $0x1], 0  ;;  %s563_s9 = smov 0   ;;  %s565_s10 = smov 0  }
   0x2   :  { %s567_s11 = smov 0   ;;  %s569_s12 = smov 0  }
   0x3   :  { %s571_s13 = smov 0   ;;  %s573_s14 = smov 0  }
   0x4 LB: > { %s378_s15 = sadd.s32 4294967295, %s542_s14   ;;  %s379_s16 = sadd.s32 4294967294, %s542_s14   ;;  %s542_s14 = sphi %s573_s14, %s15_s14   ;;  %s538_s13 = sphi %s571_s13, %s706_s13   ;;  %s534_s12 = sphi %s569_s12, %s705_s12   ;;  %s530_s11 = sphi %s567_s11, %s704_s11   ;;  %s526_s10 = sphi %s565_s10, %s703_s10   ;;  %s522_s9 = sphi %s563_s9, %s702_s9  }
   0x5   : > { %s27_s17 = sadd.s32 1, %s538_s13  ;;  %s98_s18 = sadd.s32 1, %s530_s11 }
   0x6   : > { %p29_p0 = scmp.ge.s32.totalorder %s27_s17, 2  ;;  %p108_p1 = scmp.ne.s32.totalorder %s530_s11, %s526_s10 }
   0x7   : > { %p109_p2 = scmp.eq.s32.totalorder %s378_s15, 1  ;;  %p114_p3 = scmp.ne.s32.totalorder %s526_s10, %s522_s9 }
   0x8   : > { %s708_s17 = smov (%p29_p0, %s27_s17), 0  ;;  %p115_p5 = scmp.eq.s32.totalorder %s379_s16, 1 }
   0x9   : > { %p603_p4 = por %p109_p2, %p108_p1  ;;  %s95_s20 = ssub.s32 %s538_s13, %s708_s17 }
   0xa   : > { %p382_p6 = scmp.ge.s32.totalorder %s542_s14, 1  ;;  %p96_p7 = scmp.eq.s32.totalorder %s95_s20, 0 }
   0xb   : > { %p610_p8 = por %p115_p5, %p114_p3  ;;  %p159_p9 = scmp.lt.s32.totalorder %s542_s14, 3 }
   0xc   : > { %s616_s22 = scalar_select %p96_p7, %s530_s11, %s98_s18  }
   0xd   : > { %p160_p10 = pnand %p382_p6, %p159_p9 }
   0xe   : > { %p191_p11 = scmp.lt.s32.totalorder (!%p160_p10), %s534_s12, 1  ;;  %v544_v0 = vmov (!%p160_p10), 0   ;;  %vm218_vm0 = vcmask (!%p160_p10), 261120   ;;  %v230_v6 = vlaneseq (!%p160_p10)  ;;  %v545_v10 = vmov (!%p160_p10), 0.003125   ;;  %s187_s3 = sand.u32 (!%p160_p10), 1, %s526_s10  }
   0xf   : > { %163 = sbr.rel (%p160_p10) target bundleno = 587 (0x24b), region = 28  ;;  %459 = vset.pattern.permute.xlu0 (!%p160_p10), %v544_v0  ;;  %s632_s4 = sshll.u32 (!%p160_p10), %s187_s3, 3  ;;  %vm214_vm2 = vcmask (!%p160_p10), 7168   ;;  %v546_v16 = vmov (!%p160_p10), 0.0  }
  0x10   : > { %v231_v8 = vand.u32 (!%p160_p10), 127, %v230_v6  ;;  %s392_s5 = sshll.u32 (!%p160_p10), %s534_s12, 3  ;;  %215 = vst.msk [vmem:[#allocation2] sm:$0xff] (!%p160_p10), %vm214_vm2, %v546_v16  ;;  %s189_s7 = scalar_lea.vmem (!%p160_p10), [#allocation3], %s632_s4 }
  0x11   : > { %s245_s6 = sadd.s32 (!%p160_p10), 8, %s392_s5 }
  0x12   : > { %p393_p12 = scmp.le.s32.totalorder (!%p160_p10), %s245_s6, 10 }
  0x16   : > { %s192_s23 = scalar_select %p191_p11, %s534_s12, 1 }
  0x17   : > { %v251_v23 = vshrl.u32 (!%p393_p12), %v230_v6, 7  ;;  %v252_v24 = vstv (!%p393_p12), %s392_s5  ;;  %v254_v26 = vld [vmem:[#allocation2] sm:$0xff] (!%p393_p12) }
  0x18   : > { %s710_s23 = smov (!%p191_p11, %s192_s23), 1 }
  0x19   : > { %s387_s24 = sshll.u32 %s710_s23, 3  ;;  %v253_v25 = vadd.s32 (!%p393_p12), %v252_v24, %v251_v23 }
  0x1a   : > { %s196_s27 = scalar_lea.vmem %s697_s0, %s387_s24  ;;  %s206_s30 = scalar_lea.vmem %s698_s1, %s387_s24 }
  0x1b   : > { %v216_v1 = vld [vmem:[%s196_s27] sm:$0xff]  ;;  %vm255_vm3 = vcmp.lt.s32.totalorder (!%p393_p12), %v253_v25, 10 }
  0x1c   : > { %v219_v2 = vsel %vm218_vm0, %v216_v1, -inf  ;;  %v217_v3 = vld [vmem:[%s206_s30] sm:$0xff] }
  0x1d   : > { %220 = vmax.xlane.f32.xlu0 %v219_v2 }
  0x33   : > { %233 = vperm.xlu0 %459, %v217_v3  }
  0xaa   : > { %v221_v4 = vpop.xlane.xlu0 %220 }
  0xab   : > { %v222_v5 = vsub.f32 %v216_v1, %v221_v4 }
  0xad   : > { %v223_v7 = vmul.f32 1.442695, %v222_v5 }
  0xaf   : > { %460 = vpow2.f32 %v223_v7 }
  0xb2   : > { %v234_v9 = vpop.permute.xlu0 %233 }
  0xb3   : > { %vm235_vm1 = vcmp.eq.s32.totalorder %v231_v8, %v234_v9 }
  0xb4   : > { %v236_v11 = vsel %vm235_vm1, 0.903125, %v545_v10 }
  0xb5   : > { %v237_v12 = vmul.f32 %v236_v11, %v216_v1 }
  0xb7   : > { %v238_v15 = vsel %vm218_vm0, %v237_v12, 0.0 }
  0xb9   : > { %v461_v13 = vpop.eup %460 }
  0xba   : > { %v225_v14 = vsel %vm218_vm0, %v461_v13, 0.0 }
  0xbb   : > { %226 = vadd.xlane.f32.xlu1 %v225_v14 }
  0xbf   : > { %239 = vadd.xlane.f32.xlu1 %v238_v15 }
 0x148   : > { %v227_v17 = vpop.xlane.xlu1 %226 }
 0x149   : > { %462 = vlog2.f32 %v227_v17 }
 0x14c   : > { %v240_v20 = vpop.xlane.xlu1 %239 }
 0x152   : > { %249 = sbr.rel (%p393_p12) target bundleno = 350 (0x15e), region = 36 }
 0x153   : > { %v463_v18 = vpop.eup %462 }
 0x154   : > { %v229_v19 = vmul.f32 0.6931472, %v463_v18 }
 0x156   : > { %v241_v21 = vadd.f32 %v229_v19, %v221_v4 }
 0x158   : > { %v242_v22 = vsub.f32 %v241_v21, %v240_v20 }
 0x15a   : > { %v256_v27 = vsel %vm255_vm3, %v242_v22, 0.0 }
 0x15b   : > { %v257_v28 = vadd.f32 %v256_v27, %v254_v26 }
 0x15d   : > { %259 = vst.msk [vmem:[#allocation2] sm:$0xff] %vm214_vm2, %v257_v28 }
 0x15e PF: > { %p394_p13 = scmp.gt.s32.totalorder %s245_s6, 10 }
 0x160   : > { %263 = sbr.rel (%p394_p13) target bundleno = 360 (0x168), region = 40 }
 0x164   : > { %v264_v29 = vld [vmem:[#allocation2] sm:$0xff] (!%p394_p13) }
 0x165   : > { %v265_v30 = vadd.f32 (!%p394_p13), %v264_v29, %v242_v22 }
 0x167   : > { %267 = vst.msk [vmem:[#allocation2] sm:$0xff] %vm214_vm2, %v265_v30 }
 0x168 PF: > { %s396_s8 = sshll.u32 %s534_s12, 7  ;;  %s299_s15 = sshll.u32 %s189_s7, 4  ;;  %s648_s15 = int_to_ptr.vmem [resolvable:$true] %s299_s15 }
 0x169   : > { %s646_s20 = scalar_lea.hbm %s699_s2, %s396_s8  ;;  %s286_s24 = scalar_lea.sflag [#allocation4], %s187_s3 }
 0x16a   : > { %s464_s25 = scalar_lea.vmem %s648_s15, 128  ;;  %s547_s12 = smov [#allocation3]  }
 0x16b   : > { %p465_p0 = scmp.ne.s32.totalorder %s648_s15, %s464_s25  ;;  %s468_s26 = sshll.u32 %s547_s12, 4  ;;  %s469_s26 = int_to_ptr.vmem [resolvable:$false] %s468_s26 }
 0x16c   : > { %s470_s27 = scalar_lea.vmem %s469_s26, 256  ;;  %p471_p3 = scmp.lt.s32.totalorder %s648_s15, %s469_s26 }
 0x16d   : > { %p466_p1 = pnand %p465_p0, %p603_p4  ;;  %p472_p5 = scmp.lt.s32.totalorder %s470_s27, %s464_s25 }
 0x16e   : > { %v271_v31 = vld [vmem:[#allocation2] sm:$0xff] }
 0x16f   : > { %v273_v32 = vsel %vm214_vm2, %v271_v31, 0.0  ;;  %p467_p2 = pneg %p466_p1  ;;  %p473_p6 = por %p472_p5, %p471_p3 }
 0x170   : > { %274 = vadd.xlane.f32.xlu0 %v273_v32 }
 0x171   : > { %p474_p7 = pnand %p473_p6, %p467_p2 }
 0x1fd   : > { %v275_v33 = vpop.xlane.xlu0 %274 }
 0x1fe   : > { %v276_v34 = vrot.slane %v275_v33, 4 }
 0x200   : > { %v277_v35 = vadd.f32 %v276_v34, %v275_v33 }
 0x202   : > { %v278_v36 = vrot.slane %v277_v35, 2 }
 0x204   : > { %v279_v37 = vadd.f32 %v278_v36, %v277_v35 }
 0x206   : > { %v280_v38 = vrot.slane %v279_v37, 1 }
 0x208   : > { %v281_v39 = vadd.f32 %v280_v38, %v279_v37 }
 0x20a   : > { %399 = vpush %v281_v39 }
 0x23b   : > { %s400_s23 = spop %399 }
 0x23c   : > { %v283_v40 = vstv %s400_s23 }
 0x23d   : > { %284 = vst [vmem:[%s189_s7] sm:$0xff] %v283_v40 }
 0x23e   : > { %477 = shalt.err (!%p474_p7)
}
 0x23f   : > { %s478_s28 = scalar_lea.hbm %s646_s20, 128  ;;  %s482_s3 = scalar_lea.hbm %s699_s2, 256 }
 0x240   : > { %p479_p9 = scmp.ne.s32.totalorder %s646_s20, %s478_s28  ;;  %p483_p12 = scmp.lt.u32.totalorder %s646_s20, %s699_s2 }
 0x241   : > { %p484_p13 = scmp.lt.u32.totalorder %s482_s3, %s478_s28  ;;  %p486_p1 = scmp.lt.u32.totalorder %s478_s28, %s646_s20 }
 0x242   : > { %p480_p10 = pnand %p479_p9, %p603_p4 }
 0x243   : > { %p485_p0 = por %p484_p13, %p483_p12 }
 0x244   : > { %p481_p11 = pneg %p480_p10 }
 0x245   : > { %p487_p2 = por %p486_p1, %p485_p0 }
 0x247   : > { %p488_p3 = pnand %p487_p2, %p481_p11 }
 0x249   : > { %491 = shalt.err (!%p488_p3)
}
 0x24a   : > { %401 = dma.vmem_to_hbm [thread:$0]  (%p603_p4), %s648_s15, 128, %s646_s20, %s286_s24  }
 0x24b PF: > { %p407_p5 = scmp.ge.s32.totalorder %s542_s14, 2  ;;  %s311_s6 = sand.u32 1, %s522_s9  }
 0x24c   : > { %s312_s7 = scalar_lea.sflag [#allocation4], %s311_s6 }
 0x24d   : > { %p404_p6 = pnand %p407_p5, %p610_p8 }
 0x24f   : > { %517 = dma.done.wait (!%p404_p6), %s312_s7, 128  }
 0x250   : > { %519 = vsyncadd (!%p404_p6), %s312_s7, 4294967168  ;;  %s15_s14 = sadd.s32 1, %s542_s14   ;;  %s702_s9 = smov %s526_s10 }
 0x251   : > { %p12_p7 = scmp.ge.s32.totalorder %s15_s14, 4   ;;  %s703_s10 = smov %s530_s11 }
 0x252   : > { %s704_s11 = smov %s616_s22  ;;  %s705_s12 = smov %s538_s13 }
 0x253   : > { %s706_s13 = smov %s708_s17  ;;  %14 = sbr.rel (!%p12_p7) target bundleno = 4 (0x4), region = 82 }
 0x25a   :  { %317 = vsyncpa [#allocation4], 1 }
 0x25b   :  { %319 = vsyncpa [#allocation4 + $0x1], 1 }

</bundles_post_ra>
